<compile_context>
chip_gen: v7x
topology: tpu7x:2x2x1
jax: 0.10.0
libtpu: 0.0.40
codegen_flags: <defaults>
</compile_context>

<pallas_src>
import functools

import jax
import jax.numpy as jnp
from jax import lax
from jax.experimental import pallas as pl
from jax.experimental.pallas import tpu as pltpu

_NEG = -1e30  # f32 bias for padded logit columns; exp() underflows to 0


def _round_up(x, m):
    return (x + m - 1) // m * m


def _rnn_seq_kernel(x_ref, h0_ref, wxh_ref, whh_ref, wxo_ref, who_ref,
                    bh_ref, bo_ref, out_ref, hfin_ref, hprev_ref, *, batch):
    """Whole-sequence vanilla RNN cell.  All operands VMEM-resident.

      x_ref     (T*B, In_pad)   f32   inputs, time-major rows (row = t*B + b)
      h0_ref    (B, H)          f32   initial hidden
      wxh/whh   (In_pad,H)/(H,H)         bf16  i2h split weights
      wxo/who   (In_pad,Op)/(H,Op)       bf16  i2o split weights
      bh/bo     (1,H)/(1,Op)    f32   bo pad columns = -1e30
      out_ref   (T*B, Op)       f32   per-step log-probs
      hfin_ref  (B, H)          f32   final hidden
      hprev_ref (T*B, H)        f32   scratch: hidden entering each step
    """
    bf16 = jnp.bfloat16
    f32 = jnp.float32
    n_rows = x_ref.shape[0]
    n_steps = n_rows // batch

    wxh = wxh_ref[...]
    whh = whh_ref[...]
    bh = bh_ref[...]

    def step(t, h):                                   # h: (B, H) f32
        r = t * batch
        hprev_ref[pl.ds(r, batch), :] = h             # hidden fed into step t
        x_t = x_ref[pl.ds(r, batch), :].astype(bf16)  # (B, In_pad)
        h_new = (jnp.dot(x_t, wxh, preferred_element_type=f32)
                 + jnp.dot(h.astype(bf16), whh, preferred_element_type=f32)
                 + bh)
        return h_new

    h_fin = lax.fori_loop(0, n_steps, step, h0_ref[...], unroll=True)
    hfin_ref[...] = h_fin                             # written exactly once

    # i2o + LogSoftmax for every timestep at once (dense, outside the loop).
    xs = x_ref[...].astype(bf16)                      # (T*B, In_pad)
    hs = hprev_ref[...].astype(bf16)                  # (T*B, H)
    logits = (jnp.dot(xs, wxo_ref[...], preferred_element_type=f32)
              + jnp.dot(hs, who_ref[...], preferred_element_type=f32)
              + bo_ref[...])                          # (T*B, Out_pad) f32

    m = jnp.max(logits, axis=-1, keepdims=True)
    shifted = logits - m
    lse = jnp.log(jnp.sum(jnp.exp(shifted), axis=-1, keepdims=True))
    out_ref[...] = shifted - lse                      # single dense store


@jax.jit
def rnn_sequence_forward(xs, h0, w_i2h, b_i2h, w_i2o, b_i2o):
    """Run the RNN cell over a whole sequence inside one Pallas kernel.

    xs:    (T, B, In)      inputs per timestep (e.g. one-hot letters)
    h0:    (B, H)          initial hidden state
    w_i2h: (In + H, H)     pre-transposed: cat(x, h) @ w_i2h + b_i2h -> hidden
    w_i2o: (In + H, Out)   pre-transposed: cat(x, h) @ w_i2o + b_i2o -> logits
    Returns (log-probs (T, B, Out), final hidden (B, H)).
    """
    T, B, In = xs.shape
    H = h0.shape[1]
    Out = w_i2o.shape[1]

    In_pad = _round_up(In, 128)     # K dim of the x-matmul (MXU native width)
    Out_pad = _round_up(Out, 128)   # lane-dense logits / output

    f32, bf16 = jnp.float32, jnp.bfloat16

    xs2 = jnp.pad(xs.astype(f32), ((0, 0), (0, 0), (0, In_pad - In)))
    xs2 = xs2.reshape(T * B, In_pad)
    h0 = h0.astype(f32)
    w_i2h = w_i2h.astype(f32)
    w_i2o = w_i2o.astype(f32)

    # Split weights (cat(x,h) @ W == x @ W[:In] + h @ W[In:], exact), bf16.
    wxh = jnp.zeros((In_pad, H), f32).at[:In].set(w_i2h[:In]).astype(bf16)
    whh = w_i2h[In:].astype(bf16)
    wxo = jnp.zeros((In_pad, Out_pad), f32).at[:In, :Out].set(w_i2o[:In]).astype(bf16)
    who = jnp.zeros((H, Out_pad), f32).at[:, :Out].set(w_i2o[In:]).astype(bf16)
    # Biases stay f32; padded logit columns vanish in the softmax normalizer.
    bh = b_i2h.astype(f32).reshape(1, H)
    bo = jnp.full((1, Out_pad), _NEG, f32).at[0, :Out].set(b_i2o.astype(f32))

    kernel = functools.partial(_rnn_seq_kernel, batch=B)

    def full(shape):
        return pl.BlockSpec(shape, lambda i, _n=len(shape): (0,) * _n)

    out2, h_fin = pl.pallas_call(
        kernel,
        out_shape=(
            jax.ShapeDtypeStruct((T * B, Out_pad), f32),
            jax.ShapeDtypeStruct((B, H), f32),
        ),
        grid_spec=pltpu.PrefetchScalarGridSpec(
            num_scalar_prefetch=0,
            grid=(1,),  # whole sequence in one grid step; loop lives inside
            in_specs=[
                full((T * B, In_pad)),    # xs (resident)
                full((B, H)),             # h0
                full((In_pad, H)),        # wxh
                full((H, H)),             # whh
                full((In_pad, Out_pad)),  # wxo
                full((H, Out_pad)),       # who
                full((1, H)),             # bh
                full((1, Out_pad)),       # bo
            ],
            out_specs=(
                full((T * B, Out_pad)),   # log-probs, one dense writeback
                full((B, H)),             # final hidden
            ),
            scratch_shapes=[pltpu.VMEM((T * B, H), f32)],  # hidden history
        ),
        compiler_params=pltpu.CompilerParams(
            dimension_semantics=("arbitrary",),
        ),
    )(xs2, h0, wxh, whh, wxo, who, bh, bo)

    out = out2.reshape(T, B, Out_pad)[:, :, :Out]
    return out, h_fin


def rnn_forward(x, h, w_i2h, b_i2h, w_i2o, b_i2o):
    """Exact single-step equivalent of RNN.forward(input, hidden)."""
    out, hid = rnn_sequence_forward(x[None], h, w_i2h, b_i2h, w_i2o, b_i2o)
    return out[0], hid


if __name__ == "__main__":
    # Shapes implied by the module: N_LETTERS=57, n_hidden=128, n_categories=18.
    ALL_LETTERS = "abcdefghijklmnopqrstuvwxyzABCDEFGHIJKLMNOPQRSTUVWXYZ .,;'"
    N_LETTERS = len(ALL_LETTERS)   # 57
    N_HIDDEN = 128
    N_CATEGORIES = 18
    BATCH = 1

    key = jax.random.PRNGKey(0)
    k1, k2, k3, k4 = jax.random.split(key, 4)

    fan_in = N_LETTERS + N_HIDDEN
    bound = 1.0 / jnp.sqrt(jnp.float32(fan_in))

    # Deterministic synthetic params (PyTorch Linear-style uniform init),
    # stored pre-transposed as (in_features, out_features).
    w_i2h = jax.random.uniform(k1, (fan_in, N_HIDDEN), jnp.float32, -bound, bound)
    b_i2h = jax.random.uniform(k2, (N_HIDDEN,), jnp.float32, -bound, bound)
    w_i2o = jax.random.uniform(k3, (fan_in, N_CATEGORIES), jnp.float32, -bound, bound)
    b_i2o = jax.random.uniform(k4, (N_CATEGORIES,), jnp.float32, -bound, bound)

    # input_tensor = line_to_tensor('Albert'): (T, 1, N_LETTERS) one-hot letters.
    name = "Albert"
    idx = jnp.array([ALL_LETTERS.index(c) for c in name], jnp.int32)
    xs = jax.nn.one_hot(idx, N_LETTERS, dtype=jnp.float32)[:, None, :]  # (T, B, In)
    h0 = jnp.zeros((BATCH, N_HIDDEN), jnp.float32)  # hidden_tensor = init_hidden()

    # Fused full-sequence kernel (recurrent application of the module forward).
    outs, h_fin = rnn_sequence_forward(xs, h0, w_i2h, b_i2h, w_i2o, b_i2o)
    outs = jax.block_until_ready(outs)
    h_fin = jax.block_until_ready(h_fin)

    # --- Reference 1: matched precision (bf16 weights, f32 accum), pure JAX.
    bf16 = jnp.bfloat16
    wxh_r = w_i2h[:N_LETTERS].astype(bf16)
    whh_r = w_i2h[N_LETTERS:].astype(bf16)
    wxo_r = w_i2o[:N_LETTERS].astype(bf16)
    who_r = w_i2o[N_LETTERS:].astype(bf16)

    def ref_cell_matched(h, x):
        xb = x.astype(bf16)
        hb = h.astype(bf16)
        hid = (jnp.dot(xb, wxh_r, preferred_element_type=jnp.float32)
               + jnp.dot(hb, whh_r, preferred_element_type=jnp.float32) + b_i2h)
        logits = (jnp.dot(xb, wxo_r, preferred_element_type=jnp.float32)
                  + jnp.dot(hb, who_r, preferred_element_type=jnp.float32) + b_i2o)
        return hid, jax.nn.log_softmax(logits, axis=1)

    # --- Reference 2: original f32 PyTorch-module semantics.
    def ref_cell_f32(h, x):
        comb = jnp.concatenate([x, h], axis=1)
        hid = comb @ w_i2h + b_i2h
        out = jax.nn.log_softmax(comb @ w_i2o + b_i2o, axis=1)
        return hid, out

    def run_ref(cell):
        h = h0
        outs_r = []
        for t in range(xs.shape[0]):
            h, o = cell(h, xs[t])
            outs_r.append(o)
        return jnp.stack(outs_r), h

    ref_m_outs, ref_m_h = run_ref(ref_cell_matched)
    ref_f_outs, ref_f_h = run_ref(ref_cell_f32)

    assert outs.shape == (xs.shape[0], BATCH, N_CATEGORIES)
    assert h_fin.shape == (BATCH, N_HIDDEN)
    # Matched-precision check (same bf16/f32 mix as the kernel).
    assert jnp.allclose(outs, ref_m_outs, atol=3e-4), "matched output mismatch"
    assert jnp.allclose(h_fin, ref_m_h, atol=3e-4), "matched hidden mismatch"
    # Full-f32 module semantics, loosened for bf16 weight rounding.
    assert jnp.allclose(outs, ref_f_outs, atol=5e-2), "f32 output mismatch"
    assert jnp.allclose(h_fin, ref_f_h, atol=5e-2), "f32 hidden mismatch"

    # Single-step call with the exact module.forward signature also checks out.
    out1, hid1 = rnn_forward(xs[0], h0, w_i2h, b_i2h, w_i2o, b_i2o)
    out1 = jax.block_until_ready(out1)
    ref_h1, ref_o1 = ref_cell_matched(h0, xs[0])
    assert jnp.allclose(out1, ref_o1, atol=3e-4), "single-step output mismatch"
    assert jnp.allclose(hid1, ref_h1, atol=3e-4), "single-step hidden mismatch"

    print("KERNEL_OK")
</pallas_src>

<mosaic_0001>
module attributes {stable_mosaic.version = 11 : i64} {
  func.func @_rnn_seq_kernel(%arg0: i32, %arg1: memref<6x128xf32, #tpu.memory_space<vmem>>, %arg2: memref<1x128xf32, #tpu.memory_space<vmem>>, %arg3: memref<128x128xbf16, #tpu.memory_space<vmem>>, %arg4: memref<128x128xbf16, #tpu.memory_space<vmem>>, %arg5: memref<128x128xbf16, #tpu.memory_space<vmem>>, %arg6: memref<128x128xbf16, #tpu.memory_space<vmem>>, %arg7: memref<1x128xf32, #tpu.memory_space<vmem>>, %arg8: memref<1x128xf32, #tpu.memory_space<vmem>>, %arg9: memref<6x128xf32, #tpu.memory_space<vmem>>, %arg10: memref<1x128xf32, #tpu.memory_space<vmem>>, %arg11: memref<6x128xf32, #tpu.memory_space<vmem>>) attributes {dimension_semantics = [#tpu.dimension_semantics<arbitrary>], iteration_bounds = array<i64: 1>, scalar_prefetch = 0 : i64, scratch_operands = 1 : i64, tpu.core_type = #tpu.core_type<tc>, window_params = [{pipeline_mode = #tpu.pipeline_mode<synchronous>, transform_indices = @transform_0, window_bounds = array<i64: 6, 128>}, {pipeline_mode = #tpu.pipeline_mode<synchronous>, transform_indices = @transform_1, window_bounds = array<i64: 1, 128>}, {pipeline_mode = #tpu.pipeline_mode<synchronous>, transform_indices = @transform_2, window_bounds = array<i64: 128, 128>}, {pipeline_mode = #tpu.pipeline_mode<synchronous>, transform_indices = @transform_3, window_bounds = array<i64: 128, 128>}, {pipeline_mode = #tpu.pipeline_mode<synchronous>, transform_indices = @transform_4, window_bounds = array<i64: 128, 128>}, {pipeline_mode = #tpu.pipeline_mode<synchronous>, transform_indices = @transform_5, window_bounds = array<i64: 128, 128>}, {pipeline_mode = #tpu.pipeline_mode<synchronous>, transform_indices = @transform_6, window_bounds = array<i64: 1, 128>}, {pipeline_mode = #tpu.pipeline_mode<synchronous>, transform_indices = @transform_7, window_bounds = array<i64: 1, 128>}, {pipeline_mode = #tpu.pipeline_mode<synchronous>, transform_indices = @transform_8, window_bounds = array<i64: 6, 128>}, {pipeline_mode = #tpu.pipeline_mode<synchronous>, transform_indices = @transform_9, window_bounds = array<i64: 1, 128>}]} {
    %c0 = arith.constant 0 : index
    %c0_0 = arith.constant 0 : index
    %0 = vector.load %arg3[%c0, %c0_0] : memref<128x128xbf16, #tpu.memory_space<vmem>>, vector<128x128xbf16>
    %c0_1 = arith.constant 0 : index
    %c0_2 = arith.constant 0 : index
    %1 = vector.load %arg4[%c0_1, %c0_2] : memref<128x128xbf16, #tpu.memory_space<vmem>>, vector<128x128xbf16>
    %c0_3 = arith.constant 0 : index
    %c0_4 = arith.constant 0 : index
    %2 = vector.load %arg7[%c0_3, %c0_4] : memref<1x128xf32, #tpu.memory_space<vmem>>, vector<1x128xf32>
    %c0_5 = arith.constant 0 : index
    %c0_6 = arith.constant 0 : index
    %3 = vector.load %arg2[%c0_5, %c0_6] : memref<1x128xf32, #tpu.memory_space<vmem>>, vector<1x128xf32>
    %c0_i32 = arith.constant 0 : i32
    %c1_i32 = arith.constant 1 : i32
    %4 = arith.muli %c0_i32, %c1_i32 : i32
    %5 = arith.index_cast %4 : i32 to index
    %c0_7 = arith.constant 0 : index
    %6 = vector.load %arg11[%5, %c0_7] : memref<6x128xf32, #tpu.memory_space<vmem>>, vector<1x128xf32>
    tpu.vector_store %arg11[%5, %c0_7], %3 {strides = array<i32>} : memref<6x128xf32, #tpu.memory_space<vmem>>, vector<1x128xf32>,
    %7 = arith.index_cast %4 : i32 to index
    %c0_8 = arith.constant 0 : index
    %8 = vector.load %arg1[%7, %c0_8] : memref<6x128xf32, #tpu.memory_space<vmem>>, vector<1x128xf32>
    %9 = arith.truncf %8 : vector<1x128xf32> to vector<1x128xbf16>
    %cst = arith.constant dense<0.000000e+00> : vector<1x128xf32>
    %10 = tpu.matmul %9, %0, %cst {dimension_numbers = #tpu.dot_dimension_numbers<[1], [0], [0], [1], [0, 0, 1, 1], [], []>} : vector<1x128xbf16>, vector<128x128xbf16>, vector<1x128xf32> -> vector<1x128xf32>
    %11 = arith.truncf %3 : vector<1x128xf32> to vector<1x128xbf16>
    %cst_9 = arith.constant dense<0.000000e+00> : vector<1x128xf32>
    %12 = tpu.matmul %11, %1, %cst_9 {dimension_numbers = #tpu.dot_dimension_numbers<[1], [0], [0], [1], [0, 0, 1, 1], [], []>} : vector<1x128xbf16>, vector<128x128xbf16>, vector<1x128xf32> -> vector<1x128xf32>
    %13 = arith.addf %10, %12 : vector<1x128xf32>
    %14 = arith.addf %13, %2 : vector<1x128xf32>
    %c1_i32_10 = arith.constant 1 : i32
    %c1_i32_11 = arith.constant 1 : i32
    %15 = arith.muli %c1_i32_10, %c1_i32_11 : i32
    %16 = arith.index_cast %15 : i32 to index
    %c0_12 = arith.constant 0 : index
    %17 = vector.load %arg11[%16, %c0_12] : memref<6x128xf32, #tpu.memory_space<vmem>>, vector<1x128xf32>
    tpu.vector_store %arg11[%16, %c0_12], %14 {strides = array<i32>} : memref<6x128xf32, #tpu.memory_space<vmem>>, vector<1x128xf32>,
    %18 = arith.index_cast %15 : i32 to index
    %c0_13 = arith.constant 0 : index
    %19 = vector.load %arg1[%18, %c0_13] : memref<6x128xf32, #tpu.memory_space<vmem>>, vector<1x128xf32>
    %20 = arith.truncf %19 : vector<1x128xf32> to vector<1x128xbf16>
    %cst_14 = arith.constant dense<0.000000e+00> : vector<1x128xf32>
    %21 = tpu.matmul %20, %0, %cst_14 {dimension_numbers = #tpu.dot_dimension_numbers<[1], [0], [0], [1], [0, 0, 1, 1], [], []>} : vector<1x128xbf16>, vector<128x128xbf16>, vector<1x128xf32> -> vector<1x128xf32>
    %22 = arith.truncf %14 : vector<1x128xf32> to vector<1x128xbf16>
    %cst_15 = arith.constant dense<0.000000e+00> : vector<1x128xf32>
    %23 = tpu.matmul %22, %1, %cst_15 {dimension_numbers = #tpu.dot_dimension_numbers<[1], [0], [0], [1], [0, 0, 1, 1], [], []>} : vector<1x128xbf16>, vector<128x128xbf16>, vector<1x128xf32> -> vector<1x128xf32>
    %24 = arith.addf %21, %23 : vector<1x128xf32>
    %25 = arith.addf %24, %2 : vector<1x128xf32>
    %c2_i32 = arith.constant 2 : i32
    %c1_i32_16 = arith.constant 1 : i32
    %26 = arith.muli %c2_i32, %c1_i32_16 : i32
    %27 = arith.index_cast %26 : i32 to index
    %c0_17 = arith.constant 0 : index
    %28 = vector.load %arg11[%27, %c0_17] : memref<6x128xf32, #tpu.memory_space<vmem>>, vector<1x128xf32>
    tpu.vector_store %arg11[%27, %c0_17], %25 {strides = array<i32>} : memref<6x128xf32, #tpu.memory_space<vmem>>, vector<1x128xf32>,
    %29 = arith.index_cast %26 : i32 to index
    %c0_18 = arith.constant 0 : index
    %30 = vector.load %arg1[%29, %c0_18] : memref<6x128xf32, #tpu.memory_space<vmem>>, vector<1x128xf32>
    %31 = arith.truncf %30 : vector<1x128xf32> to vector<1x128xbf16>
    %cst_19 = arith.constant dense<0.000000e+00> : vector<1x128xf32>
    %32 = tpu.matmul %31, %0, %cst_19 {dimension_numbers = #tpu.dot_dimension_numbers<[1], [0], [0], [1], [0, 0, 1, 1], [], []>} : vector<1x128xbf16>, vector<128x128xbf16>, vector<1x128xf32> -> vector<1x128xf32>
    %33 = arith.truncf %25 : vector<1x128xf32> to vector<1x128xbf16>
    %cst_20 = arith.constant dense<0.000000e+00> : vector<1x128xf32>
    %34 = tpu.matmul %33, %1, %cst_20 {dimension_numbers = #tpu.dot_dimension_numbers<[1], [0], [0], [1], [0, 0, 1, 1], [], []>} : vector<1x128xbf16>, vector<128x128xbf16>, vector<1x128xf32> -> vector<1x128xf32>
    %35 = arith.addf %32, %34 : vector<1x128xf32>
    %36 = arith.addf %35, %2 : vector<1x128xf32>
    %c3_i32 = arith.constant 3 : i32
    %c1_i32_21 = arith.constant 1 : i32
    %37 = arith.muli %c3_i32, %c1_i32_21 : i32
    %38 = arith.index_cast %37 : i32 to index
    %c0_22 = arith.constant 0 : index
    %39 = vector.load %arg11[%38, %c0_22] : memref<6x128xf32, #tpu.memory_space<vmem>>, vector<1x128xf32>
    tpu.vector_store %arg11[%38, %c0_22], %36 {strides = array<i32>} : memref<6x128xf32, #tpu.memory_space<vmem>>, vector<1x128xf32>,
    %40 = arith.index_cast %37 : i32 to index
    %c0_23 = arith.constant 0 : index
    %41 = vector.load %arg1[%40, %c0_23] : memref<6x128xf32, #tpu.memory_space<vmem>>, vector<1x128xf32>
    %42 = arith.truncf %41 : vector<1x128xf32> to vector<1x128xbf16>
    %cst_24 = arith.constant dense<0.000000e+00> : vector<1x128xf32>
    %43 = tpu.matmul %42, %0, %cst_24 {dimension_numbers = #tpu.dot_dimension_numbers<[1], [0], [0], [1], [0, 0, 1, 1], [], []>} : vector<1x128xbf16>, vector<128x128xbf16>, vector<1x128xf32> -> vector<1x128xf32>
    %44 = arith.truncf %36 : vector<1x128xf32> to vector<1x128xbf16>
    %cst_25 = arith.constant dense<0.000000e+00> : vector<1x128xf32>
    %45 = tpu.matmul %44, %1, %cst_25 {dimension_numbers = #tpu.dot_dimension_numbers<[1], [0], [0], [1], [0, 0, 1, 1], [], []>} : vector<1x128xbf16>, vector<128x128xbf16>, vector<1x128xf32> -> vector<1x128xf32>
    %46 = arith.addf %43, %45 : vector<1x128xf32>
    %47 = arith.addf %46, %2 : vector<1x128xf32>
    %c4_i32 = arith.constant 4 : i32
    %c1_i32_26 = arith.constant 1 : i32
    %48 = arith.muli %c4_i32, %c1_i32_26 : i32
    %49 = arith.index_cast %48 : i32 to index
    %c0_27 = arith.constant 0 : index
    %50 = vector.load %arg11[%49, %c0_27] : memref<6x128xf32, #tpu.memory_space<vmem>>, vector<1x128xf32>
    tpu.vector_store %arg11[%49, %c0_27], %47 {strides = array<i32>} : memref<6x128xf32, #tpu.memory_space<vmem>>, vector<1x128xf32>,
    %51 = arith.index_cast %48 : i32 to index
    %c0_28 = arith.constant 0 : index
    %52 = vector.load %arg1[%51, %c0_28] : memref<6x128xf32, #tpu.memory_space<vmem>>, vector<1x128xf32>
    %53 = arith.truncf %52 : vector<1x128xf32> to vector<1x128xbf16>
    %cst_29 = arith.constant dense<0.000000e+00> : vector<1x128xf32>
    %54 = tpu.matmul %53, %0, %cst_29 {dimension_numbers = #tpu.dot_dimension_numbers<[1], [0], [0], [1], [0, 0, 1, 1], [], []>} : vector<1x128xbf16>, vector<128x128xbf16>, vector<1x128xf32> -> vector<1x128xf32>
    %55 = arith.truncf %47 : vector<1x128xf32> to vector<1x128xbf16>
    %cst_30 = arith.constant dense<0.000000e+00> : vector<1x128xf32>
    %56 = tpu.matmul %55, %1, %cst_30 {dimension_numbers = #tpu.dot_dimension_numbers<[1], [0], [0], [1], [0, 0, 1, 1], [], []>} : vector<1x128xbf16>, vector<128x128xbf16>, vector<1x128xf32> -> vector<1x128xf32>
    %57 = arith.addf %54, %56 : vector<1x128xf32>
    %58 = arith.addf %57, %2 : vector<1x128xf32>
    %c5_i32 = arith.constant 5 : i32
    %c1_i32_31 = arith.constant 1 : i32
    %59 = arith.muli %c5_i32, %c1_i32_31 : i32
    %60 = arith.index_cast %59 : i32 to index
    %c0_32 = arith.constant 0 : index
    %61 = vector.load %arg11[%60, %c0_32] : memref<6x128xf32, #tpu.memory_space<vmem>>, vector<1x128xf32>
    tpu.vector_store %arg11[%60, %c0_32], %58 {strides = array<i32>} : memref<6x128xf32, #tpu.memory_space<vmem>>, vector<1x128xf32>,
    %62 = arith.index_cast %59 : i32 to index
    %c0_33 = arith.constant 0 : index
    %63 = vector.load %arg1[%62, %c0_33] : memref<6x128xf32, #tpu.memory_space<vmem>>, vector<1x128xf32>
    %64 = arith.truncf %63 : vector<1x128xf32> to vector<1x128xbf16>
    %cst_34 = arith.constant dense<0.000000e+00> : vector<1x128xf32>
    %65 = tpu.matmul %64, %0, %cst_34 {dimension_numbers = #tpu.dot_dimension_numbers<[1], [0], [0], [1], [0, 0, 1, 1], [], []>} : vector<1x128xbf16>, vector<128x128xbf16>, vector<1x128xf32> -> vector<1x128xf32>
    %66 = arith.truncf %58 : vector<1x128xf32> to vector<1x128xbf16>
    %cst_35 = arith.constant dense<0.000000e+00> : vector<1x128xf32>
    %67 = tpu.matmul %66, %1, %cst_35 {dimension_numbers = #tpu.dot_dimension_numbers<[1], [0], [0], [1], [0, 0, 1, 1], [], []>} : vector<1x128xbf16>, vector<128x128xbf16>, vector<1x128xf32> -> vector<1x128xf32>
    %68 = arith.addf %65, %67 : vector<1x128xf32>
    %69 = arith.addf %68, %2 : vector<1x128xf32>
    %c6_i32 = arith.constant 6 : i32
    %c0_36 = arith.constant 0 : index
    %c0_37 = arith.constant 0 : index
    %70 = vector.load %arg10[%c0_36, %c0_37] : memref<1x128xf32, #tpu.memory_space<vmem>>, vector<1x128xf32>
    tpu.vector_store %arg10[%c0_36, %c0_37], %69 {strides = array<i32>} : memref<1x128xf32, #tpu.memory_space<vmem>>, vector<1x128xf32>,
    %c0_38 = arith.constant 0 : index
    %c0_39 = arith.constant 0 : index
    %71 = vector.load %arg1[%c0_38, %c0_39] : memref<6x128xf32, #tpu.memory_space<vmem>>, vector<6x128xf32>
    %72 = arith.truncf %71 : vector<6x128xf32> to vector<6x128xbf16>
    %c0_40 = arith.constant 0 : index
    %c0_41 = arith.constant 0 : index
    %73 = vector.load %arg11[%c0_40, %c0_41] : memref<6x128xf32, #tpu.memory_space<vmem>>, vector<6x128xf32>
    %74 = arith.truncf %73 : vector<6x128xf32> to vector<6x128xbf16>
    %c0_42 = arith.constant 0 : index
    %c0_43 = arith.constant 0 : index
    %75 = vector.load %arg5[%c0_42, %c0_43] : memref<128x128xbf16, #tpu.memory_space<vmem>>, vector<128x128xbf16>
    %cst_44 = arith.constant dense<0.000000e+00> : vector<6x128xf32>
    %76 = tpu.matmul %72, %75, %cst_44 {dimension_numbers = #tpu.dot_dimension_numbers<[1], [0], [0], [1], [0, 0, 1, 1], [], []>} : vector<6x128xbf16>, vector<128x128xbf16>, vector<6x128xf32> -> vector<6x128xf32>
    %c0_45 = arith.constant 0 : index
    %c0_46 = arith.constant 0 : index
    %77 = vector.load %arg6[%c0_45, %c0_46] : memref<128x128xbf16, #tpu.memory_space<vmem>>, vector<128x128xbf16>
    %cst_47 = arith.constant dense<0.000000e+00> : vector<6x128xf32>
    %78 = tpu.matmul %74, %77, %cst_47 {dimension_numbers = #tpu.dot_dimension_numbers<[1], [0], [0], [1], [0, 0, 1, 1], [], []>} : vector<6x128xbf16>, vector<128x128xbf16>, vector<6x128xf32> -> vector<6x128xf32>
    %79 = arith.addf %76, %78 : vector<6x128xf32>
    %c0_48 = arith.constant 0 : index
    %c0_49 = arith.constant 0 : index
    %80 = vector.load %arg8[%c0_48, %c0_49] : memref<1x128xf32, #tpu.memory_space<vmem>>, vector<1x128xf32>
    %81 = vector.broadcast %80 : vector<1x128xf32> to vector<6x128xf32>
    %82 = arith.addf %79, %81 : vector<6x128xf32>
    %cst_50 = arith.constant dense<0xFF800000> : vector<6xf32>
    %83 = vector.multi_reduction <maximumf>, %82, %cst_50 [1] : vector<6x128xf32> to vector<6xf32>
    %84 = vector.shape_cast %83 : vector<6xf32> to vector<6x1xf32>
    %85 = vector.broadcast %84 : vector<6x1xf32> to vector<6x128xf32>
    %86 = arith.subf %82, %85 : vector<6x128xf32>
    %87 = math.exp %86 : vector<6x128xf32>
    %cst_51 = arith.constant dense<0.000000e+00> : vector<6xf32>
    %88 = vector.multi_reduction <add>, %87, %cst_51 [1] : vector<6x128xf32> to vector<6xf32>
    %89 = vector.shape_cast %88 : vector<6xf32> to vector<6x1xf32>
    %90 = math.log %89 : vector<6x1xf32>
    %91 = vector.broadcast %90 : vector<6x1xf32> to vector<6x128xf32>
    %92 = arith.subf %86, %91 : vector<6x128xf32>
    %c0_52 = arith.constant 0 : index
    %c0_53 = arith.constant 0 : index
    %93 = vector.load %arg9[%c0_52, %c0_53] : memref<6x128xf32, #tpu.memory_space<vmem>>, vector<6x128xf32>
    tpu.vector_store %arg9[%c0_52, %c0_53], %92 {strides = array<i32>} : memref<6x128xf32, #tpu.memory_space<vmem>>, vector<6x128xf32>,
    return
  }
  func.func @transform_0(%arg0: i32) -> (i32, i32) {
    %c0_i32 = arith.constant 0 : i32
    %c0_i32_0 = arith.constant 0 : i32
    %c0_i32_1 = arith.constant 0 : i32
    return %c0_i32, %c0_i32_0 : i32, i32
  }
  func.func @transform_1(%arg0: i32) -> (i32, i32) {
    %c0_i32 = arith.constant 0 : i32
    %c0_i32_0 = arith.constant 0 : i32
    %c0_i32_1 = arith.constant 0 : i32
    return %c0_i32, %c0_i32_0 : i32, i32
  }
  func.func @transform_2(%arg0: i32) -> (i32, i32) {
    %c0_i32 = arith.constant 0 : i32
    %c0_i32_0 = arith.constant 0 : i32
    %c0_i32_1 = arith.constant 0 : i32
    return %c0_i32, %c0_i32_0 : i32, i32
  }
  func.func @transform_3(%arg0: i32) -> (i32, i32) {
    %c0_i32 = arith.constant 0 : i32
    %c0_i32_0 = arith.constant 0 : i32
    %c0_i32_1 = arith.constant 0 : i32
    return %c0_i32, %c0_i32_0 : i32, i32
  }
  func.func @transform_4(%arg0: i32) -> (i32, i32) {
    %c0_i32 = arith.constant 0 : i32
    %c0_i32_0 = arith.constant 0 : i32
    %c0_i32_1 = arith.constant 0 : i32
    return %c0_i32, %c0_i32_0 : i32, i32
  }
  func.func @transform_5(%arg0: i32) -> (i32, i32) {
    %c0_i32 = arith.constant 0 : i32
    %c0_i32_0 = arith.constant 0 : i32
    %c0_i32_1 = arith.constant 0 : i32
    return %c0_i32, %c0_i32_0 : i32, i32
  }
  func.func @transform_6(%arg0: i32) -> (i32, i32) {
    %c0_i32 = arith.constant 0 : i32
    %c0_i32_0 = arith.constant 0 : i32
    %c0_i32_1 = arith.constant 0 : i32
    return %c0_i32, %c0_i32_0 : i32, i32
  }
  func.func @transform_7(%arg0: i32) -> (i32, i32) {
    %c0_i32 = arith.constant 0 : i32
    %c0_i32_0 = arith.constant 0 : i32
    %c0_i32_1 = arith.constant 0 : i32
    return %c0_i32, %c0_i32_0 : i32, i32
  }
  func.func @transform_8(%arg0: i32) -> (i32, i32) {
    %c0_i32 = arith.constant 0 : i32
    %c0_i32_0 = arith.constant 0 : i32
    %c0_i32_1 = arith.constant 0 : i32
    return %c0_i32, %c0_i32_0 : i32, i32
  }
  func.func @transform_9(%arg0: i32) -> (i32, i32) {
    %c0_i32 = arith.constant 0 : i32
    %c0_i32_0 = arith.constant 0 : i32
    %c0_i32_1 = arith.constant 0 : i32
    return %c0_i32, %c0_i32_0 : i32, i32
  }
}

</mosaic_0001>

<bundles_post_ra>
// kernel: rnn_sequence_forward.1
= control target key start
LH: loop header
LB: loop body
LE: loop exit
PB: predicated region body
PF: predicated region fallthrough
CT: control target
= control target key end

     0   :  { %v1428_v1 = vmov 0.0   ;;  %vm1429_vm0 = vmmov 0   ;;  %s1898_s0 = inlined_call_operand.vmem [shape: f32[6,128], index: 0, kind: input, shape index: {}]   ;;  %s1899_s1 = inlined_call_operand.vmem [shape: f32[1,128], index: 1, kind: input, shape index: {}]   ;;  %s1900_s2 = inlined_call_operand.vmem [shape: bf16[128,128], index: 2, kind: input, shape index: {}]   ;;  %s1901_s3 = inlined_call_operand.vmem [shape: bf16[128,128], index: 3, kind: input, shape index: {}]   ;;  %s1902_s4 = inlined_call_operand.vmem [shape: bf16[128,128], index: 4, kind: input, shape index: {}]   ;;  %s1903_s5 = inlined_call_operand.vmem [shape: bf16[128,128], index: 5, kind: input, shape index: {}]   ;;  %s1904_s6 = inlined_call_operand.vmem [shape: f32[1,128], index: 6, kind: input, shape index: {}]   ;;  %s1905_s7 = inlined_call_operand.vmem [shape: f32[1,128], index: 7, kind: input, shape index: {}]   ;;  %s1906_s8 = inlined_call_operand.vmem [shape: f32[6,128], index: 8, kind: output, shape index: {0}]   ;;  %s1907_s9 = inlined_call_operand.hbm [shape: f32[1,128], index: 9, kind: output, shape index: {1}]  }
   0x1   :  { %v1484_v0 = vld [vmem:[%s1901_s3] sm:$0xff]   ;;  %1085 = vmatprep.subr.bf16.mxu0 %v1428_v1  ;;  %1105 = vmatprep.subr.bf16.mxu1 %v1428_v1  ;;  %v1497_v3 = vld [vmem:[%s1901_s3 + $0x8] sm:$0xff]   ;;  %v1515_v5 = vld [vmem:[%s1901_s3 + $0x10] sm:$0xff]  }
   0x2   :  { %v1491_v2 = vld [vmem:[%s1900_s2] sm:$0xff]   ;;  %1086 = vmatpush3.bf16.msra.mxu0 %v1484_v0  ;;  %1101 = vmatprep.mubr.msk.bf16.mxu0 %vm1429_vm0, %v1428_v1  ;;  %v1506_v4 = vld [vmem:[%s1900_s2 + $0x8] sm:$0xff]   ;;  %v1522_v6 = vld [vmem:[%s1900_s2 + $0x10] sm:$0xff]  }
   0x3   :  { %1106 = vmatpush3.bf16.msra.mxu1 %v1491_v2  ;;  %1087 = vmatprep.subr.bf16.mxu0 %v1428_v1  ;;  %v1529_v7 = vld [vmem:[%s1901_s3 + $0x18] sm:$0xff]   ;;  %v1543_v9 = vld [vmem:[%s1901_s3 + $0x20] sm:$0xff]   ;;  %v1556_v11 = vld [vmem:[%s1901_s3 + $0x28] sm:$0xff]  }
   0x4   :  { %1107 = vmatprep.subr.bf16.mxu1 %v1428_v1  ;;  %1121 = vmatprep.mubr.msk.bf16.mxu1 %vm1429_vm0, %v1428_v1  ;;  %v1536_v8 = vld [vmem:[%s1900_s2 + $0x18] sm:$0xff]   ;;  %v1550_v10 = vld [vmem:[%s1900_s2 + $0x20] sm:$0xff]   ;;  %v1564_v13 = vld [vmem:[%s1900_s2 + $0x28] sm:$0xff]  }
   0x5   :  { %v66_v12 = vld [vmem:[%s1899_s1] sm:$0x1]  ;;  %v1573_v14 = vld [vmem:[%s1901_s3 + $0x30] sm:$0xff]   ;;  %v1587_v16 = vld [vmem:[%s1901_s3 + $0x38] sm:$0xff]  }
   0x6   :  { %1088 = vmatpush3.bf16.msra.mxu0 %v1497_v3  ;;  %67 = vst [vmem:[#allocation2] sm:$0x1] %v66_v12  ;;  %v1578_v15 = vld [vmem:[%s1900_s2 + $0x30] sm:$0xff]   ;;  %v1592_v17 = vld [vmem:[%s1900_s2 + $0x38] sm:$0xff]   ;;  %v68_v18 = vld [vmem:[%s1898_s0] sm:$0x1] }
   0x7   :  { %1108 = vmatpush3.bf16.msra.mxu1 %v1506_v4  ;;  %1089 = vmatprep.subr.bf16.mxu0 %v1428_v1 }
   0x8   :  { %1109 = vmatprep.subr.bf16.mxu1 %v1428_v1 }
   0xa   :  { %1090 = vmatpush3.bf16.msra.mxu0 %v1515_v5 }
   0xb   :  { %1110 = vmatpush3.bf16.msra.mxu1 %v1522_v6  ;;  %1091 = vmatprep.subr.bf16.mxu0 %v1428_v1 }
   0xc   :  { %1111 = vmatprep.subr.bf16.mxu1 %v1428_v1 }
   0xe   :  { %1092 = vmatpush3.bf16.msra.mxu0 %v1529_v7 }
   0xf   :  { %1112 = vmatpush3.bf16.msra.mxu1 %v1536_v8  ;;  %1093 = vmatprep.subr.bf16.mxu0 %v1428_v1 }
  0x10   :  { %1113 = vmatprep.subr.bf16.mxu1 %v1428_v1 }
  0x12   :  { %1094 = vmatpush3.bf16.msra.mxu0 %v1543_v9 }
  0x13   :  { %1114 = vmatpush3.bf16.msra.mxu1 %v1550_v10  ;;  %1095 = vmatprep.subr.bf16.mxu0 %v1428_v1 }
  0x14   :  { %1115 = vmatprep.subr.bf16.mxu1 %v1428_v1 }
  0x16   :  { %1096 = vmatpush3.bf16.msra.mxu0 %v1556_v11 }
  0x17   :  { %1116 = vmatpush3.bf16.msra.mxu1 %v1564_v13  ;;  %1097 = vmatprep.subr.bf16.mxu0 %v1428_v1 }
  0x18   :  { %1117 = vmatprep.subr.bf16.mxu1 %v1428_v1 }
  0x1a   :  { %1098 = vmatpush3.bf16.msra.mxu0 %v1573_v14 }
  0x1b   :  { %1118 = vmatpush3.bf16.msra.mxu1 %v1578_v15  ;;  %1099 = vmatprep.subr.bf16.mxu0 %v1428_v1 }
  0x1c   :  { %15 = vsyncpa [#allocation4], 0  ;;  %1119 = vmatprep.subr.bf16.mxu1 %v1428_v1  ;;  %v70_v19 = vpack.c.bf16 %v66_v12, %v66_v12  ;;  %v69_v20 = vpack.c.bf16 %v68_v18, %v68_v18  ;;  %v249_v21 = vld [vmem:[%s1898_s0 + $0x1] sm:$0x1]  ;;  %v1665_v24 = vld [vmem:[%s1904_s6] sm:$0x1] }
  0x1d   :  { %v250_v22 = vpack.c.bf16 %v249_v21, %v249_v21  ;;  %v334_v39 = vld [vmem:[%s1898_s0 + $0x2] sm:$0x1]  ;;  %v419_v52 = vld [vmem:[%s1898_s0 + $0x3] sm:$0x1]  ;;  %v504_v18 = vld [vmem:[%s1898_s0 + $0x4] sm:$0x1] }
  0x1e   :  { %1100 = vmatpush3.bf16.msra.mxu0 %v1587_v16  ;;  %v335_v40 = vpack.c.bf16 %v334_v39, %v334_v39  ;;  %v420_v53 = vpack.c.bf16 %v419_v52, %v419_v52  ;;  %v1393_v39 = vld [vmem:[%s1903_s5 + $0x20] sm:$0xff]   ;;  %vm894_vm1 = vcmask 1045504   ;;  %s1430_s18 = smov [#allocation3]  }
  0x1f   :  { %1120 = vmatpush3.bf16.msra.mxu1 %v1592_v17  ;;  %1125 = vmatprep.subr.bf16.mxu0 %v1428_v1  ;;  %s916_s19 = sshll.u32 %s1430_s18, 4  ;;  %s917_s19 = int_to_ptr.vmem [resolvable:$true] %s916_s19 }
  0x20   :  { %1145 = vmatprep.subr.bf16.mxu1 %v1428_v1  ;;  %s1404_s20 = scalar_lea.vmem %s917_s19, 16  ;;  %p1409_p1 = scmp.lt.s32.totalorder %s917_s19, %s917_s19 }
  0x21   :  { %1102 = vmatmul.mubr.bf16.vlgmr.msra.gmra.mrb[0].mxu0 %v70_v19  ;;  %v505_v19 = vpack.c.bf16 %v504_v18, %v504_v18  ;;  %p1405_p0 = scmp.ne.s32.totalorder %s917_s19, %s1404_s20 }
  0x22   :  { %1122 = vmatmul.mubr.bf16.vlgmr.msra.gmra.mrb[0].mxu1 %v69_v20  ;;  %1126 = vmatpush3.bf16.msra.mxu0 %v1484_v0 }
  0x23   :  { %1146 = vmatpush3.bf16.msra.mxu1 %v1491_v2  ;;  %1127 = vmatprep.subr.bf16.mxu0 %v1428_v1 }
  0x24   :  { %1147 = vmatprep.subr.bf16.mxu1 %v1428_v1  ;;  %1161 = vmatprep.mubr.msk.bf16.mxu1 %vm1429_vm0, %v1428_v1 }
  0x25   :  { %1141 = vmatprep.mubr.msk.bf16.mxu0 %vm1429_vm0, %v1428_v1 }
  0x26   :  { %1128 = vmatpush3.bf16.msra.mxu0 %v1497_v3 }
  0x27   :  { %1148 = vmatpush3.bf16.msra.mxu1 %v1506_v4  ;;  %1129 = vmatprep.subr.bf16.mxu0 %v1428_v1 }
  0x28   :  { %1149 = vmatprep.subr.bf16.mxu1 %v1428_v1 }
  0x2a   :  { %1130 = vmatpush3.bf16.msra.mxu0 %v1515_v5 }
  0x2b   :  { %1150 = vmatpush3.bf16.msra.mxu1 %v1522_v6  ;;  %1131 = vmatprep.subr.bf16.mxu0 %v1428_v1 }
  0x2c   :  { %1151 = vmatprep.subr.bf16.mxu1 %v1428_v1 }
  0x2e   :  { %1132 = vmatpush3.bf16.msra.mxu0 %v1529_v7 }
  0x2f   :  { %1152 = vmatpush3.bf16.msra.mxu1 %v1536_v8  ;;  %1133 = vmatprep.subr.bf16.mxu0 %v1428_v1 }
  0x30   :  { %1153 = vmatprep.subr.bf16.mxu1 %v1428_v1 }
  0x32   :  { %1134 = vmatpush3.bf16.msra.mxu0 %v1543_v9 }
  0x33   :  { %1154 = vmatpush3.bf16.msra.mxu1 %v1550_v10  ;;  %1135 = vmatprep.subr.bf16.mxu0 %v1428_v1 }
  0x34   :  { %1155 = vmatprep.subr.bf16.mxu1 %v1428_v1 }
  0x36   :  { %1136 = vmatpush3.bf16.msra.mxu0 %v1556_v11 }
  0x37   :  { %1156 = vmatpush3.bf16.msra.mxu1 %v1564_v13  ;;  %1137 = vmatprep.subr.bf16.mxu0 %v1428_v1 }
  0x38   :  { %1157 = vmatprep.subr.bf16.mxu1 %v1428_v1 }
  0x3a   :  { %1138 = vmatpush3.bf16.msra.mxu0 %v1573_v14 }
  0x3b   :  { %1158 = vmatpush3.bf16.msra.mxu1 %v1578_v15  ;;  %1139 = vmatprep.subr.bf16.mxu0 %v1428_v1 }
  0x3c   :  { %1159 = vmatprep.subr.bf16.mxu1 %v1428_v1 }
  0x3e   :  { %1140 = vmatpush3.bf16.msra.mxu0 %v1587_v16 }
  0x3f   :  { %1160 = vmatpush3.bf16.msra.mxu1 %v1592_v17  ;;  %1165 = vmatprep.subr.bf16.mxu0 %v1428_v1 }
  0x40   :  { %1185 = vmatprep.subr.bf16.mxu1 %v1428_v1 }
  0x42   :  { %1162 = vmatmul.mubr.bf16.vlgmr.msra.gmra.mrb[4].mxu1 %v250_v22  ;;  %v1394_v22 = vld [vmem:[%s1902_s4 + $0x28] sm:$0xff]  }
  0x43   :  { %1186 = vmatpush3.bf16.msra.mxu1 %v1491_v2  ;;  %1201 = vmatprep.mubr.msk.bf16.mxu1 %vm1429_vm0, %v1428_v1 }
  0x44   :  { %1187 = vmatprep.subr.bf16.mxu1 %v1428_v1 }
  0x47   :  { %1188 = vmatpush3.bf16.msra.mxu1 %v1506_v4 }
  0x48   :  { %1189 = vmatprep.subr.bf16.mxu1 %v1428_v1 }
  0x4b   :  { %1190 = vmatpush3.bf16.msra.mxu1 %v1522_v6 }
  0x4c   :  { %1191 = vmatprep.subr.bf16.mxu1 %v1428_v1 }
  0x4f   :  { %1192 = vmatpush3.bf16.msra.mxu1 %v1536_v8 }
  0x50   :  { %1193 = vmatprep.subr.bf16.mxu1 %v1428_v1 }
  0x53   :  { %1194 = vmatpush3.bf16.msra.mxu1 %v1550_v10 }
  0x54   :  { %1195 = vmatprep.subr.bf16.mxu1 %v1428_v1 }
  0x57   :  { %1196 = vmatpush3.bf16.msra.mxu1 %v1564_v13 }
  0x58   :  { %1197 = vmatprep.subr.bf16.mxu1 %v1428_v1 }
  0x5b   :  { %1198 = vmatpush3.bf16.msra.mxu1 %v1578_v15 }
  0x5c   :  { %1199 = vmatprep.subr.bf16.mxu1 %v1428_v1 }
  0x5f   :  { %1200 = vmatpush3.bf16.msra.mxu1 %v1592_v17 }
  0x60   :  { %1225 = vmatprep.subr.bf16.mxu1 %v1428_v1 }
  0x62   :  { %1202 = vmatmul.mubr.bf16.vlgmr.msra.gmra.mrb[8].mxu1 %v335_v40  ;;  %v1395_v40 = vld [vmem:[%s1903_s5 + $0x28] sm:$0xff]  }
  0x63   :  { %1226 = vmatpush3.bf16.msra.mxu1 %v1491_v2  ;;  %1241 = vmatprep.mubr.msk.bf16.mxu1 %vm1429_vm0, %v1428_v1 }
  0x64   :  { %1227 = vmatprep.subr.bf16.mxu1 %v1428_v1 }
  0x67   :  { %1228 = vmatpush3.bf16.msra.mxu1 %v1506_v4 }
  0x68   :  { %1229 = vmatprep.subr.bf16.mxu1 %v1428_v1 }
  0x6b   :  { %1230 = vmatpush3.bf16.msra.mxu1 %v1522_v6 }
  0x6c   :  { %1231 = vmatprep.subr.bf16.mxu1 %v1428_v1 }
  0x6f   :  { %1232 = vmatpush3.bf16.msra.mxu1 %v1536_v8 }
  0x70   :  { %1233 = vmatprep.subr.bf16.mxu1 %v1428_v1 }
  0x73   :  { %1234 = vmatpush3.bf16.msra.mxu1 %v1550_v10 }
  0x74   :  { %1235 = vmatprep.subr.bf16.mxu1 %v1428_v1 }
  0x77   :  { %1236 = vmatpush3.bf16.msra.mxu1 %v1564_v13 }
  0x78   :  { %1237 = vmatprep.subr.bf16.mxu1 %v1428_v1 }
  0x7b   :  { %1238 = vmatpush3.bf16.msra.mxu1 %v1578_v15 }
  0x7c   :  { %1239 = vmatprep.subr.bf16.mxu1 %v1428_v1 }
  0x7f   :  { %1240 = vmatpush3.bf16.msra.mxu1 %v1592_v17 }
  0x80   :  { %1265 = vmatprep.subr.bf16.mxu1 %v1428_v1 }
  0x82   :  { %1242 = vmatmul.mubr.bf16.vlgmr.msra.gmra.mrb[12].mxu1 %v420_v53 }
  0x83   :  { %1266 = vmatpush3.bf16.msra.mxu1 %v1491_v2  ;;  %1281 = vmatprep.mubr.msk.bf16.mxu1 %vm1429_vm0, %v1428_v1 }
  0x84   :  { %1267 = vmatprep.subr.bf16.mxu1 %v1428_v1 }
  0x87   :  { %1268 = vmatpush3.bf16.msra.mxu1 %v1506_v4 }
  0x88   :  { %1269 = vmatprep.subr.bf16.mxu1 %v1428_v1 }
  0x8b   :  { %1270 = vmatpush3.bf16.msra.mxu1 %v1522_v6 }
  0x8c   :  { %1271 = vmatprep.subr.bf16.mxu1 %v1428_v1 }
  0x8f   :  { %1272 = vmatpush3.bf16.msra.mxu1 %v1536_v8 }
  0x90   :  { %1273 = vmatprep.subr.bf16.mxu1 %v1428_v1 }
  0x93   :  { %1274 = vmatpush3.bf16.msra.mxu1 %v1550_v10 }
  0x94   :  { %1275 = vmatprep.subr.bf16.mxu1 %v1428_v1 }
  0x97   :  { %1276 = vmatpush3.bf16.msra.mxu1 %v1564_v13 }
  0x98   :  { %1277 = vmatprep.subr.bf16.mxu1 %v1428_v1 }
  0x9b   :  { %1278 = vmatpush3.bf16.msra.mxu1 %v1578_v15 }
  0x9c   :  { %1279 = vmatprep.subr.bf16.mxu1 %v1428_v1 }
  0x9f   :  { %1280 = vmatpush3.bf16.msra.mxu1 %v1592_v17 }
  0xa0   :  { %1305 = vmatprep.subr.bf16.mxu1 %v1428_v1 }
  0xa2   :  { %1282 = vmatmul.mubr.bf16.vlgmr.msra.gmra.mrb[16].mxu1 %v505_v19 }
  0xa3   :  { %1306 = vmatpush3.bf16.msra.mxu1 %v1491_v2  ;;  %1321 = vmatprep.mubr.msk.bf16.mxu1 %vm1429_vm0, %v1428_v1 }
  0xa4   :  { %1307 = vmatprep.subr.bf16.mxu1 %v1428_v1 }
  0xa7   :  { %1308 = vmatpush3.bf16.msra.mxu1 %v1506_v4 }
  0xa8   :  { %1309 = vmatprep.subr.bf16.mxu1 %v1428_v1 }
  0xab   :  { %1310 = vmatpush3.bf16.msra.mxu1 %v1522_v6 }
  0xac   :  { %1311 = vmatprep.subr.bf16.mxu1 %v1428_v1 }
  0xaf   :  { %1312 = vmatpush3.bf16.msra.mxu1 %v1536_v8 }
  0xb0   :  { %1313 = vmatprep.subr.bf16.mxu1 %v1428_v1 }
  0xb3   :  { %1314 = vmatpush3.bf16.msra.mxu1 %v1550_v10 }
  0xb4   :  { %1315 = vmatprep.subr.bf16.mxu1 %v1428_v1 }
  0xb7   :  { %1316 = vmatpush3.bf16.msra.mxu1 %v1564_v13 }
  0xb8   :  { %1317 = vmatprep.subr.bf16.mxu1 %v1428_v1 }
  0xbb   :  { %1318 = vmatpush3.bf16.msra.mxu1 %v1578_v15  ;;  %v1388_v15 = vld [vmem:[%s1902_s4 + $0x10] sm:$0xff]  }
  0xbc   :  { %1319 = vmatprep.subr.bf16.mxu1 %v1428_v1 }
  0xbf   :  { %1320 = vmatpush3.bf16.msra.mxu1 %v1592_v17  ;;  %v1392_v17 = vld [vmem:[%s1902_s4 + $0x20] sm:$0xff]  }
  0xc0   :  { %1345 = vmatprep.subr.bf16.mxu1 %v1428_v1 }
  0xf4   :  { %v153_v23 = vpop.f32.mrb[0].mxu0 }
  0xf5   :  { %v241_v25 = vpop.f32.mrb[0].mxu1  ;;  %v1103_v26 = vpop.f32.mrb[1].mxu0 }
  0xf6   :  { %v242_v27 = vadd.f32 %v241_v25, %v153_v23  ;;  %v1123_v28 = vpop.f32.mrb[1].mxu1  ;;  %v156_v29 = vpop.f32.mrb[2].mxu0  ;;  %v1396_v23 = vld [vmem:[%s1902_s4 + $0x30] sm:$0xff]   ;;  %v1398_v25 = vld [vmem:[%s1902_s4 + $0x38] sm:$0xff]   ;;  %v674_v26 = vld [vmem:[%s1898_s0] sm:$0x3f] }
  0xf7   :  { %v244_v30 = vpop.f32.mrb[2].mxu1  ;;  %v1104_v31 = vpop.f32.mrb[3].mxu0 }
  0xf8   :  { %v247_v32 = vadd.f32 %v242_v27, %v1665_v24  ;;  %v1124_v33 = vpop.f32.mrb[3].mxu1  ;;  %v675_v27 = vpack.c.bf16 %v674_v26, %v674_v26 }
  0xfa   :  { %248 = vst [vmem:[#allocation2 + $0x1] sm:$0x1] %v247_v32  ;;  %v251_v34 = vpack.c.bf16 %v247_v32, %v247_v32 }
  0xfc   :  { %1142 = vmatmul.mubr.bf16.vlgmr.msra.gmra.mrb[4].mxu0 %v251_v34  ;;  %v1385_v34 = vld [vmem:[%s1903_s5] sm:$0xff]  }
  0xfd   :  { %1166 = vmatpush3.bf16.msra.mxu0 %v1484_v0  ;;  %1181 = vmatprep.mubr.msk.bf16.mxu0 %vm1429_vm0, %v1428_v1 }
  0xfe   :  { %1167 = vmatprep.subr.bf16.mxu0 %v1428_v1 }
 0x101   :  { %1168 = vmatpush3.bf16.msra.mxu0 %v1497_v3 }
 0x102   :  { %1169 = vmatprep.subr.bf16.mxu0 %v1428_v1 }
 0x105   :  { %1170 = vmatpush3.bf16.msra.mxu0 %v1515_v5 }
 0x106   :  { %1171 = vmatprep.subr.bf16.mxu0 %v1428_v1 }
 0x109   :  { %1172 = vmatpush3.bf16.msra.mxu0 %v1529_v7 }
 0x10a   :  { %1173 = vmatprep.subr.bf16.mxu0 %v1428_v1 }
 0x10d   :  { %1174 = vmatpush3.bf16.msra.mxu0 %v1543_v9 }
 0x10e   :  { %1175 = vmatprep.subr.bf16.mxu0 %v1428_v1 }
 0x111   :  { %1176 = vmatpush3.bf16.msra.mxu0 %v1556_v11 }
 0x112   :  { %1177 = vmatprep.subr.bf16.mxu0 %v1428_v1 }
 0x115   :  { %1178 = vmatpush3.bf16.msra.mxu0 %v1573_v14  ;;  %v326_v35 = vpop.f32.mrb[4].mxu1 }
 0x116   :  { %1179 = vmatprep.subr.bf16.mxu0 %v1428_v1  ;;  %v1163_v36 = vpop.f32.mrb[5].mxu1 }
 0x117   :  { %v329_v37 = vpop.f32.mrb[6].mxu1  ;;  %v1387_v36 = vld [vmem:[%s1903_s5 + $0x8] sm:$0xff]  }
 0x118   :  { %v1164_v38 = vpop.f32.mrb[7].mxu1  ;;  %v1389_v37 = vld [vmem:[%s1903_s5 + $0x10] sm:$0xff]  }
 0x119   :  { %1180 = vmatpush3.bf16.msra.mxu0 %v1587_v16  ;;  %v1391_v38 = vld [vmem:[%s1903_s5 + $0x18] sm:$0xff]  }
 0x11a   :  { %1205 = vmatprep.subr.bf16.mxu0 %v1428_v1 }
 0x135   :  { %v411_v48 = vpop.f32.mrb[8].mxu1 }
 0x136   :  { %v1203_v49 = vpop.f32.mrb[9].mxu1 }
 0x137   :  { %v414_v50 = vpop.f32.mrb[10].mxu1 }
 0x138   :  { %v1204_v51 = vpop.f32.mrb[11].mxu1 }
 0x155   :  { %v496_v61 = vpop.f32.mrb[12].mxu1 }
 0x156   :  { %v1243_v62 = vpop.f32.mrb[13].mxu1 }
 0x157   :  { %v499_v63 = vpop.f32.mrb[14].mxu1 }
 0x158   :  { %v1244_v12 = vpop.f32.mrb[15].mxu1 }
 0x1cf   :  { %v286_v41 = vpop.f32.mrb[4].mxu0 }
 0x1d0   :  { %v327_v42 = vadd.f32 %v326_v35, %v286_v41  ;;  %v1143_v43 = vpop.f32.mrb[5].mxu0  ;;  %v1397_v41 = vld [vmem:[%s1903_s5 + $0x30] sm:$0xff]  }
 0x1d1   :  { %v289_v44 = vpop.f32.mrb[6].mxu0 }
 0x1d2   :  { %v332_v45 = vadd.f32 %v327_v42, %v1665_v24  ;;  %v1144_v46 = vpop.f32.mrb[7].mxu0  ;;  %v1399_v42 = vld [vmem:[%s1903_s5 + $0x38] sm:$0xff]  }
 0x1d4   :  { %333 = vst [vmem:[#allocation2 + $0x2] sm:$0x1] %v332_v45  ;;  %v336_v47 = vpack.c.bf16 %v332_v45, %v332_v45 }
 0x1d6   :  { %1182 = vmatmul.mubr.bf16.vlgmr.msra.gmra.mrb[8].mxu0 %v336_v47 }
 0x1d7   :  { %1206 = vmatpush3.bf16.msra.mxu0 %v1484_v0  ;;  %1221 = vmatprep.mubr.msk.bf16.mxu0 %vm1429_vm0, %v1428_v1 }
 0x1d8   :  { %1207 = vmatprep.subr.bf16.mxu0 %v1428_v1 }
 0x1db   :  { %1208 = vmatpush3.bf16.msra.mxu0 %v1497_v3 }
 0x1dc   :  { %1209 = vmatprep.subr.bf16.mxu0 %v1428_v1 }
 0x1df   :  { %1210 = vmatpush3.bf16.msra.mxu0 %v1515_v5 }
 0x1e0   :  { %1211 = vmatprep.subr.bf16.mxu0 %v1428_v1 }
 0x1e3   :  { %1212 = vmatpush3.bf16.msra.mxu0 %v1529_v7 }
 0x1e4   :  { %1213 = vmatprep.subr.bf16.mxu0 %v1428_v1 }
 0x1e7   :  { %1214 = vmatpush3.bf16.msra.mxu0 %v1543_v9 }
 0x1e8   :  { %1215 = vmatprep.subr.bf16.mxu0 %v1428_v1 }
 0x1eb   :  { %1216 = vmatpush3.bf16.msra.mxu0 %v1556_v11 }
 0x1ec   :  { %1217 = vmatprep.subr.bf16.mxu0 %v1428_v1 }
 0x1ef   :  { %1218 = vmatpush3.bf16.msra.mxu0 %v1573_v14 }
 0x1f0   :  { %1219 = vmatprep.subr.bf16.mxu0 %v1428_v1 }
 0x1f3   :  { %1220 = vmatpush3.bf16.msra.mxu0 %v1587_v16 }
 0x1f4   :  { %1245 = vmatprep.subr.bf16.mxu0 %v1428_v1 }
 0x2a9   :  { %v371_v54 = vpop.f32.mrb[8].mxu0 }
 0x2aa   :  { %v412_v55 = vadd.f32 %v411_v48, %v371_v54  ;;  %v1183_v56 = vpop.f32.mrb[9].mxu0 }
 0x2ab   :  { %v374_v57 = vpop.f32.mrb[10].mxu0 }
 0x2ac   :  { %v417_v58 = vadd.f32 %v412_v55, %v1665_v24  ;;  %v1184_v59 = vpop.f32.mrb[11].mxu0 }
 0x2ad   :  { %v958_v59 = vld [vmem:[%s1905_s7] ss:$0 sm:$0xff]  ;;  %s1408_s7 = scalar_lea.vmem %s917_s19, 32 }
 0x2ae   :  { %418 = vst [vmem:[#allocation2 + $0x3] sm:$0x1] %v417_v58  ;;  %v421_v60 = vpack.c.bf16 %v417_v58, %v417_v58  ;;  %p1410_p2 = scmp.lt.s32.totalorder %s1408_s7, %s1404_s20 }
 0x2b0   :  { %1222 = vmatmul.mubr.bf16.vlgmr.msra.gmra.mrb[12].mxu0 %v421_v60  ;;  %p1411_p3 = por %p1410_p2, %p1409_p1 }
 0x2b1   :  { %1246 = vmatpush3.bf16.msra.mxu0 %v1484_v0  ;;  %1261 = vmatprep.mubr.msk.bf16.mxu0 %vm1429_vm0, %v1428_v1 }
 0x2b2   :  { %1247 = vmatprep.subr.bf16.mxu0 %v1428_v1  ;;  %p1412_p4 = pnand %p1411_p3, %p1405_p0 }
 0x2b5   :  { %1248 = vmatpush3.bf16.msra.mxu0 %v1497_v3 }
 0x2b6   :  { %1249 = vmatprep.subr.bf16.mxu0 %v1428_v1 }
 0x2b9   :  { %1250 = vmatpush3.bf16.msra.mxu0 %v1515_v5 }
 0x2ba   :  { %1251 = vmatprep.subr.bf16.mxu0 %v1428_v1 }
 0x2bd   :  { %1252 = vmatpush3.bf16.msra.mxu0 %v1529_v7 }
 0x2be   :  { %1253 = vmatprep.subr.bf16.mxu0 %v1428_v1 }
 0x2c1   :  { %1254 = vmatpush3.bf16.msra.mxu0 %v1543_v9 }
 0x2c2   :  { %1255 = vmatprep.subr.bf16.mxu0 %v1428_v1 }
 0x2c5   :  { %1256 = vmatpush3.bf16.msra.mxu0 %v1556_v11 }
 0x2c6   :  { %1257 = vmatprep.subr.bf16.mxu0 %v1428_v1 }
 0x2c9   :  { %1258 = vmatpush3.bf16.msra.mxu0 %v1573_v14 }
 0x2ca   :  { %1259 = vmatprep.subr.bf16.mxu0 %v1428_v1 }
 0x2cd   :  { %1260 = vmatpush3.bf16.msra.mxu0 %v1587_v16 }
 0x2ce   :  { %1285 = vmatprep.subr.bf16.mxu0 %v1428_v1 }
 0x383   :  { %v456_v2 = vpop.f32.mrb[12].mxu0 }
 0x384   :  { %v497_v4 = vadd.f32 %v496_v61, %v456_v2  ;;  %v1223_v6 = vpop.f32.mrb[13].mxu0 }
 0x385   :  { %v459_v8 = vpop.f32.mrb[14].mxu0 }
 0x386   :  { %v502_v10 = vadd.f32 %v497_v4, %v1665_v24  ;;  %v1224_v20 = vpop.f32.mrb[15].mxu0 }
 0x388   :  { %503 = vst [vmem:[#allocation2 + $0x4] sm:$0x1] %v502_v10  ;;  %v506_v21 = vpack.c.bf16 %v502_v10, %v502_v10 }
 0x38a   :  { %1262 = vmatmul.mubr.bf16.vlgmr.msra.gmra.mrb[16].mxu0 %v506_v21 }
 0x38b   :  { %1286 = vmatpush3.bf16.msra.mxu0 %v1484_v0  ;;  %1301 = vmatprep.mubr.msk.bf16.mxu0 %vm1429_vm0, %v1428_v1  ;;  %v581_v0 = vpop.f32.mrb[16].mxu1 }
 0x38c   :  { %1287 = vmatprep.subr.bf16.mxu0 %v1428_v1 }
 0x38f   :  { %1288 = vmatpush3.bf16.msra.mxu0 %v1497_v3  ;;  %v1283_v3 = vpop.f32.mrb[17].mxu1 }
 0x390   :  { %1289 = vmatprep.subr.bf16.mxu0 %v1428_v1 }
 0x393   :  { %1290 = vmatpush3.bf16.msra.mxu0 %v1515_v5  ;;  %v584_v5 = vpop.f32.mrb[18].mxu1 }
 0x394   :  { %1291 = vmatprep.subr.bf16.mxu0 %v1428_v1 }
 0x397   :  { %1292 = vmatpush3.bf16.msra.mxu0 %v1529_v7  ;;  %v1284_v7 = vpop.f32.mrb[19].mxu1 }
 0x398   :  { %1293 = vmatprep.subr.bf16.mxu0 %v1428_v1 }
 0x39b   :  { %1294 = vmatpush3.bf16.msra.mxu0 %v1543_v9  ;;  %v589_v9 = vld [vmem:[%s1898_s0 + $0x5] sm:$0x1] }
 0x39c   :  { %1295 = vmatprep.subr.bf16.mxu0 %v1428_v1  ;;  %v590_v13 = vpack.c.bf16 %v589_v9, %v589_v9 }
 0x39e   :  { %1322 = vmatmul.mubr.bf16.vlgmr.msra.gmra.mrb[20].mxu1 %v590_v13 }
 0x39f   :  { %1296 = vmatpush3.bf16.msra.mxu0 %v1556_v11  ;;  %v1384_v11 = vld [vmem:[%s1902_s4] sm:$0xff]   ;;  %1361 = vmatprep.mubr.msk.bf16.mxu1 %vm1429_vm0, %v1428_v1 }
 0x3a0   :  { %1297 = vmatprep.subr.bf16.mxu0 %v1428_v1  ;;  %1346 = vmatpush3.bf16.msra.mxu1 %v1384_v11 }
 0x3a1   :  { %1347 = vmatprep.subr.bf16.mxu1 %v1428_v1 }
 0x3a3   :  { %1298 = vmatpush3.bf16.msra.mxu0 %v1573_v14  ;;  %v1386_v14 = vld [vmem:[%s1902_s4 + $0x8] sm:$0xff]  }
 0x3a4   :  { %1299 = vmatprep.subr.bf16.mxu0 %v1428_v1  ;;  %1348 = vmatpush3.bf16.msra.mxu1 %v1386_v14 }
 0x3a5   :  { %1349 = vmatprep.subr.bf16.mxu1 %v1428_v1 }
 0x3a7   :  { %1300 = vmatpush3.bf16.msra.mxu0 %v1587_v16  ;;  %v1390_v16 = vld [vmem:[%s1902_s4 + $0x18] sm:$0xff]  }
 0x3a8   :  { %1325 = vmatprep.subr.bf16.mxu0 %v1428_v1  ;;  %1350 = vmatpush3.bf16.msra.mxu1 %v1388_v15 }
 0x3a9   :  { %1351 = vmatprep.subr.bf16.mxu1 %v1428_v1 }
 0x3ac   :  { %1352 = vmatpush3.bf16.msra.mxu1 %v1390_v16 }
 0x3ad   :  { %1353 = vmatprep.subr.bf16.mxu1 %v1428_v1 }
 0x3b0   :  { %1354 = vmatpush3.bf16.msra.mxu1 %v1392_v17 }
 0x3b1   :  { %1355 = vmatprep.subr.bf16.mxu1 %v1428_v1 }
 0x3b4   :  { %1356 = vmatpush3.bf16.msra.mxu1 %v1394_v22 }
 0x3b5   :  { %1357 = vmatprep.subr.bf16.mxu1 %v1428_v1 }
 0x3b8   :  { %1358 = vmatpush3.bf16.msra.mxu1 %v1396_v23 }
 0x3b9   :  { %1359 = vmatprep.subr.bf16.mxu1 %v1428_v1 }
 0x3bc   :  { %1360 = vmatpush3.bf16.msra.mxu1 %v1398_v25 }
 0x3bf   :  { %1362 = vmatmul.mubr.bf16.vlgmr.msra.gmra.mrb[24].mxu1 %v675_v27 }
 0x45d   :  { %v541_v28 = vpop.f32.mrb[16].mxu0 }
 0x45e   :  { %v582_v29 = vadd.f32 %v581_v0, %v541_v28  ;;  %v1263_v30 = vpop.f32.mrb[17].mxu0 }
 0x45f   :  { %v544_v31 = vpop.f32.mrb[18].mxu0 }
 0x460   :  { %v587_v32 = vadd.f32 %v582_v29, %v1665_v24  ;;  %v1264_v33 = vpop.f32.mrb[19].mxu0 }
 0x462   :  { %588 = vst [vmem:[#allocation2 + $0x5] sm:$0x1] %v587_v32  ;;  %v591_v35 = vpack.c.bf16 %v587_v32, %v587_v32 }
 0x464   :  { %1302 = vmatmul.mubr.bf16.vlgmr.msra.gmra.mrb[20].mxu0 %v591_v35 }
 0x465   :  { %1326 = vmatpush3.bf16.msra.mxu0 %v1385_v34  ;;  %1341 = vmatprep.mubr.msk.bf16.mxu0 %vm1429_vm0, %v1428_v1 }
 0x466   :  { %1327 = vmatprep.subr.bf16.mxu0 %v1428_v1 }
 0x469   :  { %1328 = vmatpush3.bf16.msra.mxu0 %v1387_v36  ;;  %v676_v43 = vld [vmem:[#allocation2] sm:$0x3f] }
 0x46a   :  { %1329 = vmatprep.subr.bf16.mxu0 %v1428_v1  ;;  %v677_v44 = vpack.c.bf16 %v676_v43, %v676_v43 }
 0x46d   :  { %1330 = vmatpush3.bf16.msra.mxu0 %v1389_v37 }
 0x46e   :  { %1331 = vmatprep.subr.bf16.mxu0 %v1428_v1 }
 0x471   :  { %1332 = vmatpush3.bf16.msra.mxu0 %v1391_v38  ;;  %v666_v45 = vpop.f32.mrb[20].mxu1 }
 0x472   :  { %1333 = vmatprep.subr.bf16.mxu0 %v1428_v1  ;;  %v1323_v46 = vpop.f32.mrb[21].mxu1 }
 0x473   :  { %v669_v47 = vpop.f32.mrb[22].mxu1 }
 0x474   :  { %v1324_v48 = vpop.f32.mrb[23].mxu1 }
 0x475   :  { %1334 = vmatpush3.bf16.msra.mxu0 %v1393_v39 }
 0x476   :  { %1335 = vmatprep.subr.bf16.mxu0 %v1428_v1 }
 0x479   :  { %1336 = vmatpush3.bf16.msra.mxu0 %v1395_v40 }
 0x47a   :  { %1337 = vmatprep.subr.bf16.mxu0 %v1428_v1 }
 0x47d   :  { %1338 = vmatpush3.bf16.msra.mxu0 %v1397_v41 }
 0x47e   :  { %1339 = vmatprep.subr.bf16.mxu0 %v1428_v1 }
 0x481   :  { %1340 = vmatpush3.bf16.msra.mxu0 %v1399_v42 }
 0x484   :  { %1342 = vmatmul.mubr.bf16.vlgmr.msra.gmra.mrb[24].mxu0 %v677_v44 }
 0x492   :  { %v880_v49 = vpop.f32.mrb[24].mxu1 }
 0x493   :  { %v1363_v50 = vpop.f32.mrb[25].mxu1 }
 0x494   :  { %v883_v51 = vpop.f32.mrb[26].mxu1 }
 0x495   :  { %v1364_v52 = vpop.f32.mrb[27].mxu1 }
 0x537   :  { %v626_v53 = vpop.f32.mrb[20].mxu0 }
 0x538   :  { %v667_v54 = vadd.f32 %v666_v45, %v626_v53  ;;  %v1303_v55 = vpop.f32.mrb[21].mxu0 }
 0x539   :  { %v629_v56 = vpop.f32.mrb[22].mxu0 }
 0x53a   :  { %v1304_v57 = vpop.f32.mrb[23].mxu0  ;;  %v672_v58 = vadd.f32 %v667_v54, %v1665_v24 }
 0x53c   :  { %673 = vst [vmem:[#allocation3] sm:$0x1] %v672_v58 }
 0x557   :  { %v792_v1 = vpop.f32.mrb[24].mxu0 }
 0x558   :  { %v881_v60 = vadd.f32 %v880_v49, %v792_v1  ;;  %v1343_v61 = vpop.f32.mrb[25].mxu0 }
 0x559   :  { %v795_v62 = vpop.f32.mrb[26].mxu0 }
 0x55a   :  { %v1344_v63 = vpop.f32.mrb[27].mxu0  ;;  %v893_v12 = vadd.f32 %v958_v59, %v881_v60 }
 0x55c   :  { %v895_v18 = vsel %vm894_vm1, %v893_v12, -inf }
 0x55d   :  { %896 = vmax.xlane.f32.xlu0 %v895_v18 }
 0x5ea   :  { %v897_v19 = vpop.xlane.xlu0 %896 }
 0x5eb   :  { %v898_v2 = vsub.f32 %v893_v12, %v897_v19 }
 0x5ed   :  { %v899_v4 = vmul.f32 1.442695, %v898_v2 }
 0x5ef   :  { %1400 = vpow2.f32 %v899_v4 }
 0x5f9   :  { %v1401_v6 = vpop.eup %1400 }
 0x5fa   :  { %v901_v24 = vsel %vm894_vm1, %v1401_v6, 0.0 }
 0x5fb   :  { %902 = vadd.xlane.f32.xlu0 %v901_v24 }
 0x5fc   :  { %1415 = shalt.err (!%p1412_p4)
}
 0x5fd   :  { %s1416_s2 = scalar_lea.hbm %s1907_s9, 16 }
 0x5fe   :  { %p1417_p5 = scmp.ne.s32.totalorder %s1907_s9, %s1416_s2  ;;  %p1420_p6 = scmp.lt.u32.totalorder %s1416_s2, %s1907_s9 }
 0x600   :  { %p1422_p7 = pnand %p1420_p6, %p1417_p5 }
 0x602   :  { %1425 = shalt.err (!%p1422_p7)
}
 0x603   :  { %919 = dma.vmem_to_hbm [thread:$0]  %s917_s19, 16, %s1907_s9, [#allocation4]  }
 0x688   :  { %v903_v8 = vpop.xlane.xlu0 %902 }
 0x689   :  { %1402 = vlog2.f32 %v903_v8 }
 0x693   :  { %v1403_v10 = vpop.eup %1402 }
 0x694   :  { %v905_v20 = vmul.f32 0.6931472, %v1403_v10 }
 0x696   :  { %v906_v21 = vsub.f32 %v898_v2, %v905_v20 }
 0x698   :  { %907 = vst [vmem:[%s1906_s8] sm:$0x3f] %v906_v21 }
 0x699   :  { %1426 = dma.done.wait [#allocation4], 16  }
 0x69a   :  { %1427 = vsyncadd [#allocation4], 4294967280 }
 0x69b   :  { %925 = vsyncpa [#allocation4], 1 }

</bundles_post_ra>
